<compile_context>
chip_gen: v6e
topology: v6e:2x2x1
jax: 0.10.0
libtpu: 0.0.40
codegen_flags: <defaults>
</compile_context>

<pallas_src>
import functools

import jax
import jax.numpy as jnp
from jax.experimental import pallas as pl
from jax.experimental.pallas import tpu as pltpu

_INV_SQRT2 = 0.7071067811865476
_MIB = 1024 * 1024


def _round_up(x, m):
    return (x + m - 1) // m * m


@functools.lru_cache(maxsize=1)
def _tpu_info():
    """Returns (generation or None, per-core VMEM bytes, tensorcores/chip)."""
    vmem = 128 * _MIB
    gen = None
    try:
        info = pltpu.get_tpu_info()
        cap = getattr(info, "vmem_capacity_bytes", None)
        if cap:
            vmem = int(cap)
    except Exception:
        pass
    try:
        kind = jax.devices()[0].device_kind.lower()
        if "v7" in kind or "7x" in kind:
            gen = 7
        elif "v6" in kind:
            gen = 6
        elif "v5" in kind:
            gen = 5
    except Exception:
        pass
    if gen == 7:
        vmem = min(vmem, 64 * _MIB)          # 64 MiB per TensorCore on v7x
    num_tc = 2 if (gen == 7 or vmem <= 64 * _MIB) else 1
    return gen, vmem, num_tc


def _ffn_kernel(x_ref, w1_ref, b1_ref, w2_ref, b2_ref, o_ref, acc_ref):
    """Grid = (row tile i <parallel>, hidden tile k <arbitrary / reduction>).

    x_ref  : (tm, Dp)       input rows (compute dtype)
    w1_ref : (Dp, th)       fc1 weight block, (in, out) layout
    b1_ref : (1, th)  f32   fc1 bias block (pre-cast)
    w2_ref : (th, Dp)       fc2 weight block, (in, out) layout
    b2_ref : (1, Dp)  f32   fc2 bias (pre-cast)
    o_ref  : (tm, Dp)       output rows
    acc_ref: (tm, Dp) f32   fc2 accumulator (resident across k)
    """
    k = pl.program_id(1)

    @pl.when(k == 0)
    def _():
        acc_ref[...] = jnp.zeros_like(acc_ref)

    # fc1: native-dtype MXU matmul, f32 accumulation.
    h = jnp.dot(x_ref[...], w1_ref[...], preferred_element_type=jnp.float32)
    h = h + b1_ref[...]

    # Exact erf-GELU (matches torch.nn.GELU() default), kept in f32.
    h = 0.5 * h * (1.0 + jax.lax.erf(h * _INV_SQRT2))

    # TODO(synk): activation dropout is identity here (eval mode); training-mode
    # stochastic dropout via pltpu.prng_* is not implemented.

    # fc2 partial product: cast hidden back to the weight dtype so the second
    # matmul stays on the fast (e.g. bf16) MXU path; accumulate in f32.
    acc_ref[...] += jnp.dot(h.astype(w2_ref.dtype), w2_ref[...],
                            preferred_element_type=jnp.float32)

    @pl.when(k == pl.num_programs(1) - 1)
    def _():
        o_ref[...] = (acc_ref[...] + b2_ref[...]).astype(o_ref.dtype)


def prepare_ffn_params(w1, b1, w2, b2, *, compute_dtype=None):
    """One-time parameter prep (hoisted out of the per-call path).

    PyTorch nn.Linear layout in:  w1 (H, D), b1 (H,), w2 (D, H), b2 (D,).
    Returns (in, out)-layout weights, zero-padded so D is a multiple of 128
    lanes and H a multiple of 256 (so the fc2 contraction tile is >= 256),
    with biases pre-cast to f32.  If compute_dtype is given (e.g. bf16) the
    weights are cast once here.
    """
    H, D = w1.shape
    assert w2.shape == (D, H) and b1.shape == (H,) and b2.shape == (D,)
    wdt = jnp.dtype(compute_dtype) if compute_dtype is not None else w1.dtype
    Dp = _round_up(D, 128)
    Hp = _round_up(H, 256)
    w1t = jnp.zeros((Dp, Hp), wdt).at[:D, :H].set(w1.T.astype(wdt))
    w2t = jnp.zeros((Hp, Dp), wdt).at[:H, :D].set(w2.T.astype(wdt))
    b1p = jnp.zeros((1, Hp), jnp.float32).at[0, :H].set(b1.astype(jnp.float32))
    b2p = jnp.zeros((1, Dp), jnp.float32).at[0, :D].set(b2.astype(jnp.float32))
    return (w1t, b1p, w2t, b2p), (D, H)


def feed_forward_network(x, params, dims, *, tile_m=None, tile_h=None):
    """Apply the FFN to x of shape (..., D) using prepared/padded params."""
    w1t, b1p, w2t, b2p = params
    D, H = dims
    Dp, Hp = w1t.shape
    assert x.shape[-1] == D

    out_dtype = x.dtype
    cdtype = w1t.dtype
    orig_shape = x.shape
    x2d = x.reshape(-1, D)
    if x2d.dtype != cdtype:
        x2d = x2d.astype(cdtype)
    M = x2d.shape[0]

    gen, vmem_cap, num_tc = _tpu_info()
    x_item = jnp.dtype(cdtype).itemsize
    o_item = jnp.dtype(out_dtype).itemsize
    pack = max(8, 32 // x_item)          # sublane pack: 8 f32 / 16 bf16 / 32 i8

    auto_tm = tile_m is None
    auto_th = tile_h is None

    # ---- Row tile (generation aware) ----------------------------------------
    if auto_tm:
        if vmem_cap <= 64 * _MIB:                 # v7x class: 64 MiB / TC
            base_tm = 256
        elif gen == 5:                            # v5e MXU-bound already at ~256
            base_tm = 384 if M >= 384 else 256
        else:                                     # v6e / unknown: raise AI for big M
            base_tm = 512 if M >= 1024 else 256
        tile_m = min(base_tm, _round_up(M, pack))
    tile_m = max(pack, _round_up(tile_m, pack))

    # v7x megacore: make sure the "parallel" row axis has >= 2 tiles.
    if auto_tm and num_tc >= 2 and M > 128 and _round_up(M, tile_m) // tile_m < 2:
        tile_m = max(pack, _round_up(-(-M // 2), pack))

    # ---- Hidden tile ---------------------------------------------------------
    h_cands = [c for c in (1024, 512, 256, 128) if Hp % c == 0] or [Hp]
    if auto_th:
        cap = 256 if vmem_cap <= 64 * _MIB else 1024
        fits = [c for c in h_cands if c <= cap]
        tile_h = fits[0] if fits else h_cands[-1]
        tile_h = min(tile_h, Hp)
    assert Hp % tile_h == 0

    # ---- VMEM budget: shrink auto tiles until the resident set fits ---------
    budget = max(24 * _MIB, vmem_cap - 8 * _MIB)

    def vmem_est(tm, th):
        return (2 * tm * Dp * x_item            # x tiles, double-buffered
                + 2 * tm * Dp * o_item          # out tiles (worst case 2 bufs)
                + 2 * Dp * th * x_item          # W1 blocks, double-buffered
                + 2 * th * Dp * x_item          # W2 blocks, double-buffered
                + 2 * (th + Dp) * 4             # f32 biases
                + tm * Dp * 4)                  # f32 accumulator

    while vmem_est(tile_m, tile_h) > budget:
        if auto_th and tile_h > 256 and Hp % (tile_h // 2) == 0:
            tile_h //= 2
        elif auto_tm and tile_m > pack:
            tile_m = max(pack, _round_up(tile_m // 2, pack))
        else:
            break

    Mp = _round_up(M, tile_m)
    grid_m = Mp // tile_m
    grid_h = Hp // tile_h

    # Zero-pad inputs once (padded rows/lanes contribute exactly zero and are
    # sliced off below).
    if (Mp, Dp) != (M, D):
        x2d = jnp.zeros((Mp, Dp), cdtype).at[:M, :D].set(x2d)

    est = vmem_est(tile_m, tile_h)
    vmem_limit = int(min(max(int(1.5 * est), 32 * _MIB), budget))

    def out_index(i, k):
        return (i, 0)

    def run(out_spec):
        return pl.pallas_call(
            _ffn_kernel,
            out_shape=jax.ShapeDtypeStruct((Mp, Dp), out_dtype),
            grid_spec=pltpu.PrefetchScalarGridSpec(
                num_scalar_prefetch=0,
                grid=(grid_m, grid_h),                               # reduction last
                in_specs=[
                    pl.BlockSpec((tile_m, Dp), lambda i, k: (i, 0)),  # x rows
                    pl.BlockSpec((Dp, tile_h), lambda i, k: (0, k)),  # W1^T block
                    pl.BlockSpec((1, tile_h), lambda i, k: (0, k)),   # b1 (f32)
                    pl.BlockSpec((tile_h, Dp), lambda i, k: (k, 0)),  # W2^T block
                    pl.BlockSpec((1, Dp), lambda i, k: (0, 0)),       # b2 (f32)
                ],
                out_specs=out_spec,
                scratch_shapes=[pltpu.VMEM((tile_m, Dp), jnp.float32)],
            ),
            compiler_params=pltpu.CompilerParams(
                dimension_semantics=("parallel", "arbitrary"),
                vmem_limit_bytes=vmem_limit,
            ),
        )(x2d, w1t, b1p, w2t, b2p)

    # Output block index is constant over k -> a single output buffer saves
    # VMEM (perf review).  Fall back to the default spec if this jax/Mosaic
    # build rejects pipeline_mode / Buffered(1).
    specs = []
    if grid_h >= 2:
        try:
            specs.append(pl.BlockSpec((tile_m, Dp), out_index,
                                      pipeline_mode=pl.Buffered(1)))
        except Exception:
            pass
    specs.append(pl.BlockSpec((tile_m, Dp), out_index))

    out = None
    err = None
    for spec in specs:
        try:
            out = run(spec)
            break
        except Exception as e:       # fallback to the default-buffered spec
            err = e
            out = None
    if out is None:
        raise err

    return out[:M, :D].reshape(orig_shape)


def _gelu_exact(h):
    return 0.5 * h * (1.0 + jax.lax.erf(h * _INV_SQRT2))


def _reference_f32(x, w1, b1, w2, b2):
    h = _gelu_exact(jnp.dot(x, w1.T) + b1)
    return jnp.dot(h, w2.T) + b2


def _reference_bf16(x, w1, b1, w2, b2):
    bf = jnp.bfloat16
    h = jnp.dot(x.astype(bf), w1.T.astype(bf),
                preferred_element_type=jnp.float32) + b1
    h = _gelu_exact(h)
    y = jnp.dot(h.astype(bf), w2.T.astype(bf),
                preferred_element_type=jnp.float32) + b2
    return y.astype(x.dtype)


if __name__ == "__main__":
    # --- 1) Small demo at the module's natural config (f32, strict) ----------
    batch, seq = 2, 8
    embedding_dim, ffn_embedding_dim = 32, 64

    key = jax.random.PRNGKey(0)
    kx, k1, k2, k3, k4 = jax.random.split(key, 5)
    x = jax.random.normal(kx, (batch, seq, embedding_dim), dtype=jnp.float32)
    w1 = jax.random.normal(k1, (ffn_embedding_dim, embedding_dim), jnp.float32) * 0.05
    b1 = jax.random.normal(k2, (ffn_embedding_dim,), jnp.float32) * 0.05
    w2 = jax.random.normal(k3, (embedding_dim, ffn_embedding_dim), jnp.float32) * 0.05
    b2 = jax.random.normal(k4, (embedding_dim,), jnp.float32) * 0.05

    params, dims = prepare_ffn_params(w1, b1, w2, b2)       # one-time prep
    y = jax.block_until_ready(feed_forward_network(x, params, dims))
    y_ref = _reference_f32(x, w1, b1, w2, b2)
    assert y.shape == x.shape
    assert jnp.allclose(y, y_ref, atol=1e-5, rtol=1e-5), "mismatch (small f32)"

    # --- 2) Multi-tile rows + hidden-dim accumulation (f32) ------------------
    D2, H2 = 256, 640            # -> Hp=768, tile_h=256, grid_h=3
    b2_, s2_ = 2, 20             # M=40 rows; tile_m=16 -> Mp=48, grid_m=3
    kx2, k5, k6, k7, k8 = jax.random.split(jax.random.PRNGKey(1), 5)
    x2 = jax.random.normal(kx2, (b2_, s2_, D2), dtype=jnp.float32)
    w1b = jax.random.normal(k5, (H2, D2), jnp.float32) * 0.05
    b1b = jax.random.normal(k6, (H2,), jnp.float32) * 0.05
    w2b = jax.random.normal(k7, (D2, H2), jnp.float32) * 0.05
    b2b = jax.random.normal(k8, (D2,), jnp.float32) * 0.05

    p_f32, d_f32 = prepare_ffn_params(w1b, b1b, w2b, b2b)
    y2 = jax.block_until_ready(
        feed_forward_network(x2, p_f32, d_f32, tile_m=16))
    y2_ref = _reference_f32(x2, w1b, b1b, w2b, b2b)
    assert y2.shape == x2.shape
    assert jnp.allclose(y2, y2_ref, atol=2e-2, rtol=2e-2), "mismatch (tiled f32)"

    # --- 3) bf16 MXU path (perf-review item), auto tiles ----------------------
    p_bf16, d_bf16 = prepare_ffn_params(w1b, b1b, w2b, b2b,
                                        compute_dtype=jnp.bfloat16)
    y3 = jax.block_until_ready(feed_forward_network(x2, p_bf16, d_bf16))
    y3_ref = _reference_bf16(x2, w1b, b1b, w2b, b2b)
    assert y3.shape == x2.shape and y3.dtype == x2.dtype
    assert jnp.allclose(y3, y3_ref, atol=5e-3, rtol=5e-3), "mismatch (bf16)"

    print("KERNEL_OK")
</pallas_src>

<mosaic_0001>
module attributes {stable_mosaic.version = 11 : i64} {
  func.func @_ffn_kernel(%arg0: i32, %arg1: i32, %arg2: memref<16x128xf32, #tpu.memory_space<vmem>>, %arg3: memref<128x256xf32, #tpu.memory_space<vmem>>, %arg4: memref<1x256xf32, #tpu.memory_space<vmem>>, %arg5: memref<256x128xf32, #tpu.memory_space<vmem>>, %arg6: memref<1x128xf32, #tpu.memory_space<vmem>>, %arg7: memref<16x128xf32, #tpu.memory_space<vmem>>, %arg8: memref<16x128xf32, #tpu.memory_space<vmem>>) attributes {dimension_semantics = [#tpu.dimension_semantics<parallel>, #tpu.dimension_semantics<arbitrary>], iteration_bounds = array<i64: 1, 1>, scalar_prefetch = 0 : i64, scratch_operands = 1 : i64, tpu.core_type = #tpu.core_type<tc>, window_params = [{transform_indices = @transform_0, window_bounds = array<i64: 16, 128>}, {transform_indices = @transform_1, window_bounds = array<i64: 128, 256>}, {transform_indices = @transform_2, window_bounds = array<i64: 1, 256>}, {transform_indices = @transform_3, window_bounds = array<i64: 256, 128>}, {pipeline_mode = #tpu.pipeline_mode<synchronous>, transform_indices = @transform_4, window_bounds = array<i64: 1, 128>}, {transform_indices = @transform_5, window_bounds = array<i64: 16, 128>}]} {
    %c0_i32 = arith.constant 0 : i32
    %0 = arith.cmpi eq, %arg1, %c0_i32 : i32
    %1 = arith.extui %0 : i1 to i32
    %c0_i32_0 = arith.constant 0 : i32
    %2 = arith.cmpi ne, %1, %c0_i32_0 : i32
    scf.if %2 {
      %cst_18 = arith.constant 0.000000e+00 : f32
      %25 = vector.broadcast %cst_18 : f32 to vector<16x128xf32>
      %c0_19 = arith.constant 0 : index
      %c0_20 = arith.constant 0 : index
      %26 = vector.load %arg8[%c0_19, %c0_20] : memref<16x128xf32, #tpu.memory_space<vmem>>, vector<16x128xf32>
      tpu.vector_store %arg8[%c0_19, %c0_20], %25 {strides = array<i32>} : memref<16x128xf32, #tpu.memory_space<vmem>>, vector<16x128xf32>,
    } else {
    }
    %c0 = arith.constant 0 : index
    %c0_1 = arith.constant 0 : index
    %3 = vector.load %arg2[%c0, %c0_1] : memref<16x128xf32, #tpu.memory_space<vmem>>, vector<16x128xf32>
    %c0_2 = arith.constant 0 : index
    %c0_3 = arith.constant 0 : index
    %4 = vector.load %arg3[%c0_2, %c0_3] : memref<128x256xf32, #tpu.memory_space<vmem>>, vector<128x256xf32>
    %cst = arith.constant dense<0.000000e+00> : vector<16x256xf32>
    %5 = tpu.matmul %3, %4, %cst {dimension_numbers = #tpu.dot_dimension_numbers<[1], [0], [0], [1], [0, 0, 1, 1], [], []>} : vector<16x128xf32>, vector<128x256xf32>, vector<16x256xf32> -> vector<16x256xf32>
    %c0_4 = arith.constant 0 : index
    %c0_5 = arith.constant 0 : index
    %6 = vector.load %arg4[%c0_4, %c0_5] : memref<1x256xf32, #tpu.memory_space<vmem>>, vector<1x256xf32>
    %7 = vector.broadcast %6 : vector<1x256xf32> to vector<16x256xf32>
    %8 = arith.addf %5, %7 : vector<16x256xf32>
    %cst_6 = arith.constant 5.000000e-01 : f32
    %9 = vector.broadcast %cst_6 : f32 to vector<16x256xf32>
    %10 = arith.mulf %9, %8 : vector<16x256xf32>
    %cst_7 = arith.constant 0.707106769 : f32
    %11 = vector.broadcast %cst_7 : f32 to vector<16x256xf32>
    %12 = arith.mulf %8, %11 : vector<16x256xf32>
    %13 = math.erf %12 : vector<16x256xf32>
    %cst_8 = arith.constant 1.000000e+00 : f32
    %14 = vector.broadcast %cst_8 : f32 to vector<16x256xf32>
    %15 = arith.addf %14, %13 : vector<16x256xf32>
    %16 = arith.mulf %10, %15 : vector<16x256xf32>
    %c0_9 = arith.constant 0 : index
    %c0_10 = arith.constant 0 : index
    %17 = vector.load %arg8[%c0_9, %c0_10] : memref<16x128xf32, #tpu.memory_space<vmem>>, vector<16x128xf32>
    %c0_11 = arith.constant 0 : index
    %c0_12 = arith.constant 0 : index
    %18 = vector.load %arg5[%c0_11, %c0_12] : memref<256x128xf32, #tpu.memory_space<vmem>>, vector<256x128xf32>
    %cst_13 = arith.constant dense<0.000000e+00> : vector<16x128xf32>
    %19 = tpu.matmul %16, %18, %cst_13 {dimension_numbers = #tpu.dot_dimension_numbers<[1], [0], [0], [1], [0, 0, 1, 1], [], []>} : vector<16x256xf32>, vector<256x128xf32>, vector<16x128xf32> -> vector<16x128xf32>
    %20 = arith.addf %17, %19 : vector<16x128xf32>
    %c0_14 = arith.constant 0 : index
    %c0_15 = arith.constant 0 : index
    %21 = vector.load %arg8[%c0_14, %c0_15] : memref<16x128xf32, #tpu.memory_space<vmem>>, vector<16x128xf32>
    tpu.vector_store %arg8[%c0_14, %c0_15], %20 {strides = array<i32>} : memref<16x128xf32, #tpu.memory_space<vmem>>, vector<16x128xf32>,
    %c0_i32_16 = arith.constant 0 : i32
    %22 = arith.cmpi eq, %arg1, %c0_i32_16 : i32
    %23 = arith.extui %22 : i1 to i32
    %c0_i32_17 = arith.constant 0 : i32
    %24 = arith.cmpi ne, %23, %c0_i32_17 : i32
    scf.if %24 {
      %c0_18 = arith.constant 0 : index
      %c0_19 = arith.constant 0 : index
      %25 = vector.load %arg8[%c0_18, %c0_19] : memref<16x128xf32, #tpu.memory_space<vmem>>, vector<16x128xf32>
      %c0_20 = arith.constant 0 : index
      %c0_21 = arith.constant 0 : index
      %26 = vector.load %arg6[%c0_20, %c0_21] : memref<1x128xf32, #tpu.memory_space<vmem>>, vector<1x128xf32>
      %27 = vector.broadcast %26 : vector<1x128xf32> to vector<16x128xf32>
      %28 = arith.addf %25, %27 : vector<16x128xf32>
      %c0_22 = arith.constant 0 : index
      %c0_23 = arith.constant 0 : index
      %29 = vector.load %arg7[%c0_22, %c0_23] : memref<16x128xf32, #tpu.memory_space<vmem>>, vector<16x128xf32>
      tpu.vector_store %arg7[%c0_22, %c0_23], %28 {strides = array<i32>} : memref<16x128xf32, #tpu.memory_space<vmem>>, vector<16x128xf32>,
    } else {
    }
    return
  }
  func.func @transform_0(%arg0: i32, %arg1: i32) -> (i32, i32) {
    %c0_i32 = arith.constant 0 : i32
    %c0_i32_0 = arith.constant 0 : i32
    return %arg0, %c0_i32 : i32, i32
  }
  func.func @transform_1(%arg0: i32, %arg1: i32) -> (i32, i32) {
    %c0_i32 = arith.constant 0 : i32
    %c0_i32_0 = arith.constant 0 : i32
    return %c0_i32, %arg1 : i32, i32
  }
  func.func @transform_2(%arg0: i32, %arg1: i32) -> (i32, i32) {
    %c0_i32 = arith.constant 0 : i32
    %c0_i32_0 = arith.constant 0 : i32
    return %c0_i32, %arg1 : i32, i32
  }
  func.func @transform_3(%arg0: i32, %arg1: i32) -> (i32, i32) {
    %c0_i32 = arith.constant 0 : i32
    %c0_i32_0 = arith.constant 0 : i32
    return %arg1, %c0_i32 : i32, i32
  }
  func.func @transform_4(%arg0: i32, %arg1: i32) -> (i32, i32) {
    %c0_i32 = arith.constant 0 : i32
    %c0_i32_0 = arith.constant 0 : i32
    %c0_i32_1 = arith.constant 0 : i32
    return %c0_i32, %c0_i32_0 : i32, i32
  }
  func.func @transform_5(%arg0: i32, %arg1: i32) -> (i32, i32) {
    %c0_i32 = arith.constant 0 : i32
    %c0_i32_0 = arith.constant 0 : i32
    return %arg0, %c0_i32 : i32, i32
  }
}

</mosaic_0001>

<bundles_post_ra>
// kernel: tpu_custom_call.1
= control target key start
LH: loop header
LB: loop body
LE: loop exit
PB: predicated region body
PF: predicated region fallthrough
CT: control target
= control target key end

     0   :  { %10 = vsyncpa [#allocation4], 0  ;;  %s568_s0 = inlined_call_operand.hbm [shape: f32[16,128], index: 0, kind: input, shape index: {}]   ;;  %s569_s1 = inlined_call_operand.hbm [shape: f32[128,256], index: 1, kind: input, shape index: {}]   ;;  %s570_s2 = inlined_call_operand.vmem [shape: f32[1,256], index: 2, kind: input, shape index: {}]   ;;  %s571_s3 = inlined_call_operand.hbm [shape: f32[256,128], index: 3, kind: input, shape index: {}]   ;;  %s572_s4 = inlined_call_operand.vmem [shape: f32[1,128], index: 4, kind: input, shape index: {}]   ;;  %s573_s5 = inlined_call_operand.hbm [shape: f32[16,128], index: 5, kind: output, shape index: {}]  }
   0x1   :  { %11 = vsyncpa [#allocation7], 0 }
   0x2   :  { %12 = vsyncpa [#allocation5], 0  ;;  %s500_s18 = smov [#allocation6]  }
   0x3   :  { %s30_s19 = sshll.u32 %s500_s18, 4  ;;  %s31_s19 = int_to_ptr.vmem [resolvable:$true] %s30_s19 }
   0x4   :  { %s422_s20 = scalar_lea.vmem %s31_s19, 4096  ;;  %p427_p1 = scmp.lt.s32.totalorder %s31_s19, %s31_s19 }
   0x5   :  { %p423_p0 = scmp.ne.s32.totalorder %s31_s19, %s422_s20  ;;  %p428_p2 = scmp.lt.s32.totalorder %s422_s20, %s422_s20 }
   0x7   :  { %p429_p3 = por %p428_p2, %p427_p1 }
   0x9   :  { %p430_p4 = pnand %p429_p3, %p423_p0 }
   0xb   :  { %433 = shalt.err (!%p430_p4)
}
   0xc   :  { %s501_s21 = smov 256   ;;  %s502_s22 = smov 16  }
   0xd   :  { %36 = dma.hbm_to_vmem [thread:$0]  %s569_s1, 4096, %s31_s19, [#allocation7], %s501_s21, %s501_s21, %s502_s22  }
   0xe   :  { %s503_s25 = smov [#allocation3]  }
   0xf   :  { %s18_s26 = sshll.u32 %s503_s25, 4  ;;  %s19_s26 = int_to_ptr.vmem [resolvable:$true] %s18_s26 }
  0x10   :  { %s442_s27 = scalar_lea.vmem %s19_s26, 256  ;;  %p447_p6 = scmp.lt.s32.totalorder %s19_s26, %s19_s26 }
  0x11   :  { %p443_p5 = scmp.ne.s32.totalorder %s19_s26, %s442_s27  ;;  %p448_p7 = scmp.lt.s32.totalorder %s442_s27, %s442_s27 }
  0x13   :  { %p449_p8 = por %p448_p7, %p447_p6 }
  0x15   :  { %p450_p9 = pnand %p449_p8, %p443_p5 }
  0x17   :  { %453 = shalt.err (!%p450_p9)
}
  0x18   :  { %s504_s28 = smov 128   ;;  %s505_s29 = smov 8  }
  0x19   :  { %24 = dma.hbm_to_vmem [thread:$0]  %s568_s0, 256, %s19_s26, [#allocation4], %s504_s28, %s504_s28, %s505_s29  }
  0x1a   :  { %s506_s1 = smov [#allocation8]  }
  0x1b   :  { %s44_s7 = sshll.u32 %s506_s1, 4  ;;  %s45_s7 = int_to_ptr.vmem [resolvable:$true] %s44_s7 }
  0x1c   :  { %s462_s8 = scalar_lea.vmem %s45_s7, 4096  ;;  %p467_p11 = scmp.lt.s32.totalorder %s45_s7, %s45_s7 }
  0x1d   :  { %p463_p10 = scmp.ne.s32.totalorder %s45_s7, %s462_s8  ;;  %p468_p12 = scmp.lt.s32.totalorder %s462_s8, %s462_s8 }
  0x1f   :  { %p469_p13 = por %p468_p12, %p467_p11 }
  0x21   :  { %p470_p0 = pnand %p469_p13, %p463_p10 }
  0x23   :  { %473 = shalt.err (!%p470_p0)
}
  0x24   :  { %50 = dma.hbm_to_vmem [thread:$0]  %s571_s3, 4096, %s45_s7, [#allocation7], %s504_s28, %s504_s28, %s505_s29  }
  0x25   :  { %494 = dma.done.wait [#allocation4], 256  }
  0x26   :  { %495 = vsyncadd [#allocation4], 4294967040 }
  0x27   :  { %496 = dma.done.wait [#allocation7], 8192  }
  0x28   :  { %497 = vsyncadd [#allocation7], 4294959104  ;;  %v507_v0 = vmov 0.0   ;;  %v101_v1 = vld [vmem:[#allocation6 + $0xf8] sm:$0xff]  ;;  %v100_v2 = vld [vmem:[#allocation6 + $0xf0] sm:$0xff]  ;;  %s508_s12 = smov [#allocation9]  }
  0x29   :  { %178 = vmatprep.mubr.f32.mxu0 %v507_v0  ;;  %v99_v3 = vld [vmem:[#allocation6 + $0xe8] sm:$0xff]  ;;  %114 = vmatprep.subr.mxu0 %v101_v1  ;;  %v98_v4 = vld [vmem:[#allocation6 + $0xe0] sm:$0xff]  ;;  %v97_v5 = vld [vmem:[#allocation6 + $0xd8] sm:$0xff]  ;;  %s345_s13 = sshll.u32 %s508_s12, 4  ;;  %s346_s13 = int_to_ptr.vmem [resolvable:$true] %s345_s13 }
  0x2a   :  { %115 = vmatpush1.msra.mxu0 %v100_v2  ;;  %v96_v6 = vld [vmem:[#allocation6 + $0xd0] sm:$0xff]  ;;  %v95_v7 = vld [vmem:[#allocation6 + $0xc8] sm:$0xff]  ;;  %v94_v8 = vld [vmem:[#allocation6 + $0xc0] sm:$0xff]  ;;  %s474_s14 = scalar_lea.vmem %s346_s13, 256  ;;  %p479_p2 = scmp.lt.s32.totalorder %s346_s13, %s346_s13 }
  0x2b   :  { %116 = vmatprep.subr.mxu0 %v99_v3  ;;  %v93_v9 = vld [vmem:[#allocation6 + $0xb8] sm:$0xff]  ;;  %v92_v10 = vld [vmem:[#allocation6 + $0xb0] sm:$0xff]  ;;  %v91_v11 = vld [vmem:[#allocation6 + $0xa8] sm:$0xff]  ;;  %v104_v3 = vlaneseq  ;;  %p475_p1 = scmp.ne.s32.totalorder %s346_s13, %s474_s14  ;;  %p480_p3 = scmp.lt.s32.totalorder %s474_s14, %s474_s14 }
  0x2c   :  { %117 = vmatpush1.msra.mxu0 %v98_v4  ;;  %v90_v12 = vld [vmem:[#allocation6 + $0xa0] sm:$0xff]  ;;  %v89_v13 = vld [vmem:[#allocation6 + $0x98] sm:$0xff]  ;;  %v88_v14 = vld [vmem:[#allocation6 + $0x90] sm:$0xff] }
  0x2d   :  { %118 = vmatprep.subr.mxu0 %v97_v5  ;;  %v244_v15 = vld [vmem:[#allocation8 + $0xf8] sm:$0xff]  ;;  %v87_v17 = vld [vmem:[#allocation6 + $0x88] sm:$0xff]  ;;  %v243_v18 = vld [vmem:[#allocation8 + $0xf0] sm:$0xff]  ;;  %v105_v4 = vshrl.u32 %v104_v3, 7  ;;  %p481_p4 = por %p480_p3, %p479_p2 }
  0x2e   :  { %119 = vmatpush1.msra.mxu0 %v96_v6  ;;  %v228_v16 = vld [vmem:[#allocation8 + $0x78] sm:$0xff]  ;;  %359 = vmatprep.subr.mxu1 %v244_v15  ;;  %v227_v19 = vld [vmem:[#allocation8 + $0x70] sm:$0xff]  ;;  %v86_v20 = vld [vmem:[#allocation6 + $0x80] sm:$0xff] }
  0x2f   :  { %120 = vmatprep.subr.mxu0 %v95_v7  ;;  %360 = vmatpush3.msra.mxu1 %v228_v16  ;;  %v242_v21 = vld [vmem:[#allocation8 + $0xe8] sm:$0xff]  ;;  %v85_v22 = vld [vmem:[#allocation6 + $0x78] sm:$0xff]  ;;  %v84_v24 = vld [vmem:[#allocation6 + $0x70] sm:$0xff]  ;;  %v106_v5 = vsub.s32 0, %v105_v4  ;;  %v110_v7 = vsub.s32 1, %v105_v4  ;;  %p482_p5 = pnand %p481_p4, %p475_p1 }
  0x30   :  { %121 = vmatpush1.msra.mxu0 %v94_v8  ;;  %361 = vmatprep.subr.mxu1 %v243_v18  ;;  %v226_v23 = vld [vmem:[#allocation8 + $0x68] sm:$0xff]  ;;  %v82_v26 = vld [vmem:[#allocation6 + $0x60] sm:$0xff]  ;;  %v81_v27 = vld [vmem:[#allocation6 + $0x58] sm:$0xff] }
  0x31   :  { %122 = vmatprep.subr.mxu0 %v93_v9  ;;  %362 = vmatpush3.msra.mxu1 %v227_v19  ;;  %v83_v25 = vld [vmem:[#allocation6 + $0x68] sm:$0xff]  ;;  %v80_v28 = vld [vmem:[#allocation6 + $0x50] sm:$0xff]  ;;  %v78_v30 = vld [vmem:[#allocation6 + $0x40] sm:$0xff] }
  0x32   :  { %123 = vmatpush1.msra.mxu0 %v92_v10  ;;  %363 = vmatprep.subr.mxu1 %v242_v21  ;;  %v79_v29 = vld [vmem:[#allocation6 + $0x48] sm:$0xff]  ;;  %v77_v31 = vld [vmem:[#allocation6 + $0x38] sm:$0xff]  ;;  %v76_v32 = vld [vmem:[#allocation6 + $0x30] sm:$0xff] }
  0x33   :  { %124 = vmatprep.subr.mxu0 %v91_v11  ;;  %364 = vmatpush3.msra.mxu1 %v226_v23  ;;  %v75_v33 = vld [vmem:[#allocation6 + $0x28] sm:$0xff]  ;;  %v74_v34 = vld [vmem:[#allocation6 + $0x20] sm:$0xff]  ;;  %v73_v35 = vld [vmem:[#allocation6 + $0x18] sm:$0xff] }
  0x34   :  { %125 = vmatpush1.msra.mxu0 %v90_v12  ;;  %v72_v36 = vld [vmem:[#allocation6 + $0x10] sm:$0xff]  ;;  %v71_v37 = vld [vmem:[#allocation6 + $0x8] sm:$0xff]  ;;  %v70_v38 = vld [vmem:[#allocation6] sm:$0xff] }
  0x35   :  { %126 = vmatprep.subr.mxu0 %v89_v13  ;;  %v68_v39 = vld [vmem:[#allocation3] sm:$0xff]  ;;  %v69_v40 = vld [vmem:[#allocation3 + $0x8] sm:$0xff]  ;;  %v241_v41 = vld [vmem:[#allocation8 + $0xe0] sm:$0xff] }
  0x36   :  { %127 = vmatpush1.msra.mxu0 %v88_v14  ;;  %365 = vmatprep.subr.mxu1 %v241_v41  ;;  %v225_v42 = vld [vmem:[#allocation8 + $0x60] sm:$0xff]  ;;  %v240_v43 = vld [vmem:[#allocation8 + $0xd8] sm:$0xff]  ;;  %v239_v45 = vld [vmem:[#allocation8 + $0xd0] sm:$0xff] }
  0x37   :  { %128 = vmatprep.subr.mxu0 %v87_v17  ;;  %366 = vmatpush3.msra.mxu1 %v225_v42  ;;  %v224_v44 = vld [vmem:[#allocation8 + $0x58] sm:$0xff]  ;;  %v223_v46 = vld [vmem:[#allocation8 + $0x50] sm:$0xff]  ;;  %v238_v47 = vld [vmem:[#allocation8 + $0xc8] sm:$0xff] }
  0x38   :  { %129 = vmatpush1.msra.mxu0 %v86_v20  ;;  %367 = vmatprep.subr.mxu1 %v240_v43  ;;  %v222_v48 = vld [vmem:[#allocation8 + $0x48] sm:$0xff]  ;;  %v237_v49 = vld [vmem:[#allocation8 + $0xc0] sm:$0xff]  ;;  %v236_v51 = vld [vmem:[#allocation8 + $0xb8] sm:$0xff] }
  0x39   :  { %130 = vmatprep.subr.mxu0 %v85_v22  ;;  %368 = vmatpush3.msra.mxu1 %v224_v44  ;;  %v221_v50 = vld [vmem:[#allocation8 + $0x40] sm:$0xff]  ;;  %v220_v52 = vld [vmem:[#allocation8 + $0x38] sm:$0xff]  ;;  %v235_v53 = vld [vmem:[#allocation8 + $0xb0] sm:$0xff] }
  0x3a   :  { %131 = vmatpush1.msra.mxu0 %v84_v24  ;;  %369 = vmatprep.subr.mxu1 %v239_v45  ;;  %v219_v54 = vld [vmem:[#allocation8 + $0x30] sm:$0xff]  ;;  %v234_v55 = vld [vmem:[#allocation8 + $0xa8] sm:$0xff]  ;;  %v233_v57 = vld [vmem:[#allocation8 + $0xa0] sm:$0xff] }
  0x3b   :  { %132 = vmatprep.subr.mxu0 %v83_v25  ;;  %370 = vmatpush3.msra.mxu1 %v223_v46  ;;  %v218_v56 = vld [vmem:[#allocation8 + $0x28] sm:$0xff]  ;;  %v217_v58 = vld [vmem:[#allocation8 + $0x20] sm:$0xff]  ;;  %v232_v59 = vld [vmem:[#allocation8 + $0x98] sm:$0xff] }
  0x3c   :  { %133 = vmatpush1.msra.mxu0 %v82_v26  ;;  %371 = vmatprep.subr.mxu1 %v238_v47  ;;  %v216_v60 = vld [vmem:[#allocation8 + $0x18] sm:$0xff]  ;;  %v231_v61 = vld [vmem:[#allocation8 + $0x90] sm:$0xff]  ;;  %v230_v63 = vld [vmem:[#allocation8 + $0x88] sm:$0xff] }
  0x3d   :  { %134 = vmatprep.subr.mxu0 %v81_v27  ;;  %372 = vmatpush3.msra.mxu1 %v222_v48  ;;  %v215_v62 = vld [vmem:[#allocation8 + $0x10] sm:$0xff]  ;;  %v229_v1 = vld [vmem:[#allocation8 + $0x80] sm:$0xff] }
  0x3e   :  { %135 = vmatpush1.msra.mxu0 %v80_v28  ;;  %373 = vmatprep.subr.mxu1 %v237_v49  ;;  %v213_v2 = vld [vmem:[#allocation8] sm:$0xff]  ;;  %v102_v6 = vld [vmem:[%s570_s2] sm:$0x3] }
  0x3f   :  { %136 = vmatprep.subr.mxu0 %v79_v29  ;;  %374 = vmatpush3.msra.mxu1 %v221_v50  ;;  %v107_v8 = vrot.slane %v102_v6, %v106_v5  ;;  %v111_v9 = vrot.slane %v102_v6, %v110_v7 }
  0x40   :  { %137 = vmatpush1.msra.mxu0 %v78_v30  ;;  %375 = vmatprep.subr.mxu1 %v236_v51 }
  0x41   :  { %138 = vmatprep.subr.mxu0 %v77_v31  ;;  %376 = vmatpush3.msra.mxu1 %v220_v52 }
  0x42   :  { %139 = vmatpush1.msra.mxu0 %v76_v32  ;;  %377 = vmatprep.subr.mxu1 %v235_v53 }
  0x43   :  { %140 = vmatprep.subr.mxu0 %v75_v33  ;;  %378 = vmatpush3.msra.mxu1 %v219_v54 }
  0x44   :  { %141 = vmatpush1.msra.mxu0 %v74_v34  ;;  %379 = vmatprep.subr.mxu1 %v234_v55 }
  0x45   :  { %142 = vmatprep.subr.mxu0 %v73_v35  ;;  %380 = vmatpush3.msra.mxu1 %v218_v56 }
  0x46   :  { %143 = vmatpush1.msra.mxu0 %v72_v36  ;;  %381 = vmatprep.subr.mxu1 %v233_v57 }
  0x47   :  { %144 = vmatprep.subr.mxu0 %v71_v37  ;;  %382 = vmatpush3.msra.mxu1 %v217_v58 }
  0x48   :  { %145 = vmatpush1.msra.mxu0 %v70_v38  ;;  %383 = vmatprep.subr.mxu1 %v232_v59 }
  0x49   :  { %179 = vmatmul.mubr.f32.vlgmr.msra.gmra.mxu0 %v68_v39  ;;  %384 = vmatpush3.msra.mxu1 %v216_v60 }
  0x4a   :  { %184 = vmatprep.mubr.f32.mxu0 %v507_v0  ;;  %385 = vmatprep.subr.mxu1 %v231_v61  ;;  %v214_v0 = vld [vmem:[#allocation8 + $0x8] sm:$0xff] }
  0x4b   :  { %386 = vmatpush3.msra.mxu1 %v215_v62 }
  0x4c   :  { %387 = vmatprep.subr.mxu1 %v230_v63 }
  0x4d   :  { %185 = vmatmul.mubr.f32.gmra.mxu0 %v69_v40  ;;  %388 = vmatpush3.msra.mxu1 %v214_v0  ;;  %v358_v40 = vld [vmem:[%s572_s4] ss:$0 sm:$0xff] }
  0x4e   :  { %389 = vmatprep.subr.mxu1 %v229_v1 }
  0x4f   :  { %390 = vmatpush3.msra.mxu1 %v213_v2 }
 0x109   :  { %v180_v10 = vpop.f32.mrf.mxu0 }
 0x10a   :  { %v181_v11 = vadd.f32 %v180_v10, %v107_v8 }
 0x10b   :  { %v182_v12 = vpop.f32.mrf.mxu0 }
 0x10c   :  { %v195_v13 = vmul.f32 0.70710677, %v181_v11  ;;  %v183_v14 = vadd.f32 %v182_v12, %v111_v9  ;;  %v191_v28 = vmul.f32 0.5, %v181_v11 }
 0x10d   :  { %v186_v15 = vpop.f32.mrf.mxu0 }
 0x10e   :  { %406 = verf.f32 %v195_v13  ;;  %v196_v16 = vmul.f32 0.70710677, %v183_v14  ;;  %v187_v17 = vadd.f32 %v186_v15, %v107_v8  ;;  %v192_v25 = vmul.f32 0.5, %v183_v14 }
 0x10f   :  { %v188_v18 = vpop.f32.mrf.mxu0 }
 0x110   :  { %408 = verf.f32 %v196_v16  ;;  %v197_v19 = vmul.f32 0.70710677, %v187_v17  ;;  %v189_v20 = vadd.f32 %v188_v18, %v111_v9  ;;  %v193_v35 = vmul.f32 0.5, %v187_v17 }
 0x112   :  { %410 = verf.f32 %v197_v19  ;;  %v198_v21 = vmul.f32 0.70710677, %v189_v20  ;;  %v194_v33 = vmul.f32 0.5, %v189_v20 }
 0x114   :  { %412 = verf.f32 %v198_v21 }
 0x11b   :  { %v407_v22 = vpop.eup %406 }
 0x11c   :  { %v203_v24 = vadd.f32 1.0, %v407_v22 }
 0x11d   :  { %v409_v23 = vpop.eup %408 }
 0x11e   :  { %v204_v26 = vadd.f32 1.0, %v409_v23  ;;  %v207_v31 = vmul.f32 %v203_v24, %v191_v28 }
 0x11f   :  { %v411_v27 = vpop.eup %410 }
 0x120   :  { %v208_v29 = vmul.f32 %v204_v26, %v192_v25  ;;  %v205_v32 = vadd.f32 1.0, %v411_v27 }
 0x121   :  { %v413_v30 = vpop.eup %412 }
 0x122   :  { %309 = vmatprep.mubr.f32.mxu1 %v208_v29  ;;  %v206_v34 = vadd.f32 1.0, %v413_v30  ;;  %v209_v37 = vmul.f32 %v205_v32, %v193_v35 }
 0x123   :  { %310 = vmatmul.mubr.f32.vlgmr.msra.gmra.mxu1 %v207_v31 }
 0x124   :  { %v210_v36 = vmul.f32 %v206_v34, %v194_v33 }
 0x126   :  { %314 = vmatprep.mubr.f32.mxu1 %v210_v36 }
 0x127   :  { %315 = vmatmul.mubr.f32.gmra.mxu1 %v209_v37 }
 0x1e3   :  { %v391_v38 = vpop.f32.mrf.mxu1 }
 0x1e5   :  { %v392_v39 = vpop.f32.mrf.mxu1 }
 0x1e6   :  { %v393_v41 = vadd.f32 %v392_v39, %v391_v38 }
 0x1e7   :  { %v394_v42 = vpop.f32.mrf.mxu1 }
 0x1e8   :  { %v336_v43 = vadd.f32 %v393_v41, %v358_v40 }
 0x1e9   :  { %v395_v44 = vpop.f32.mrf.mxu1 }
 0x1ea   :  { %338 = vst [vmem:[#allocation9] sm:$0xff] %v336_v43  ;;  %v396_v45 = vadd.f32 %v395_v44, %v394_v42 }
 0x1ec   :  { %v337_v46 = vadd.f32 %v396_v45, %v358_v40 }
 0x1ee   :  { %339 = vst [vmem:[#allocation9 + $0x8] sm:$0xff] %v337_v46 }
 0x1ef   :  { %485 = shalt.err (!%p482_p5)
}
 0x1f0   :  { %351 = dma.vmem_to_hbm [thread:$0]  %s346_s13, 256, %s573_s5, [#allocation5], %s504_s28, %s504_s28, %s505_s29  }
 0x1f1   :  { %498 = dma.done.wait [#allocation5], 256  }
 0x1f2   :  { %499 = vsyncadd [#allocation5], 4294967040 }
 0x1f3   :  { %355 = vsyncpa [#allocation4], 1 }
 0x1f4   :  { %356 = vsyncpa [#allocation7], 1 }
 0x1f5   :  { %357 = vsyncpa [#allocation5], 1 }

</bundles_post_ra>
